<compile_context>
chip_gen: v7x
topology: tpu7x:2x2x1
jax: 0.10.0
libtpu: 0.0.40
codegen_flags: <defaults>
</compile_context>

<pallas_src>
import functools

import jax
import jax.numpy as jnp
import numpy as np
from jax.experimental import pallas as pl
from jax.experimental.pallas import tpu as pltpu

EPS = 1e-5
CARDINALITY = 32  # Bottleneck.cardinality


# ----------------------------------------------------------------------------
# Kernels
# ----------------------------------------------------------------------------
def _stage1_kernel(x_ref, wf_ref, y1_ref, sc_ref, st_ref, *, cmid):
    """Fused conv1x1 (in->mid) and shortcut conv1x1 (in->out) + partial BN stats."""
    x = x_ref[...].astype(jnp.bfloat16)                                # (TM, Cin)
    z = jnp.dot(x, wf_ref[...], preferred_element_type=jnp.float32)   # (TM, Cmid+Cout)
    y1_ref[...] = z[:, :cmid]
    sc_ref[...] = z[:, cmid:]
    st_ref[...] = jnp.concatenate(
        [jnp.sum(z, axis=0, keepdims=True),
         jnp.sum(z * z, axis=0, keepdims=True)], axis=0)               # (2, Cmid+Cout)


def _make_stage2_kernel(h, w):
    """BN1+ReLU then grouped 3x3 conv (as a block-diagonal dense conv) for one image."""
    hw = h * w

    def kernel(y1_ref, s1_ref, b1_ref, wt_ref, y2_ref, st_ref):
        # Apply precomputed BN1 affine + ReLU in f32.
        y1 = jnp.maximum(y1_ref[...] * s1_ref[...] + b1_ref[...], 0.0)  # (HW, Cmid)

        fi = jax.lax.broadcasted_iota(jnp.int32, (hw, 1), 0)
        hi = fi // w
        wi = fi - hi * w

        taps = []
        for kh in range(3):
            for kw in range(3):
                dh, dw = kh - 1, kw - 1
                if dh == 0 and dw == 0:
                    taps.append(y1.astype(jnp.bfloat16))
                    continue
                s = dh * w + dw
                # shifted[f] == y1[f + s] for every in-bounds tap position; the
                # wrapped entries are zeroed by the boundary mask below.
                # (static jnp.roll lowers to two sublane slices + concat)
                shifted = jnp.roll(y1, shift=-s, axis=0)
                valid = ((hi + dh >= 0) & (hi + dh < h) &
                         (wi + dw >= 0) & (wi + dw < w))
                taps.append(jnp.where(valid, shifted, 0.0).astype(jnp.bfloat16))

        lhs = jnp.concatenate(taps, axis=-1)                            # (HW, 9*Cmid)
        y2 = jnp.dot(lhs, wt_ref[...], preferred_element_type=jnp.float32)
        y2_ref[...] = y2
        st_ref[...] = jnp.concatenate(
            [jnp.sum(y2, axis=0, keepdims=True),
             jnp.sum(y2 * y2, axis=0, keepdims=True)], axis=0)          # (2, Cmid)

    return kernel


def _stage3_kernel(y2_ref, s2_ref, b2_ref, w3_ref, y3_ref, st_ref):
    """BN2+ReLU then conv1x1 (mid -> out) + partial BN3 stats."""
    y2 = jnp.maximum(y2_ref[...] * s2_ref[...] + b2_ref[...], 0.0)
    y3 = jnp.dot(y2.astype(jnp.bfloat16), w3_ref[...],
                 preferred_element_type=jnp.float32)                    # (TM, Cout)
    y3_ref[...] = y3
    st_ref[...] = jnp.concatenate(
        [jnp.sum(y3, axis=0, keepdims=True),
         jnp.sum(y3 * y3, axis=0, keepdims=True)], axis=0)              # (2, Cout)


def _stage4_kernel(y3_ref, sc_ref, s3_ref, b3_ref, ss_ref, bs_ref, out_ref):
    """BN3 + shortcut BN + residual add + final ReLU (all f32)."""
    res = y3_ref[...] * s3_ref[...] + b3_ref[...]
    sc = sc_ref[...] * ss_ref[...] + bs_ref[...]
    out_ref[...] = jnp.maximum(res + sc, 0.0)


# ----------------------------------------------------------------------------
# Host-side helpers (tiny per-channel math between pallas_calls)
# ----------------------------------------------------------------------------
def _bn_fold(stat, count, gamma, beta):
    """(sum, sum_sq) -> per-channel affine (scale, bias) such that y*scale+bias == BN(y)."""
    mean = stat[0:1] / count
    var = stat[1:2] / count - mean * mean       # biased batch variance (training mode)
    scale = gamma * jax.lax.rsqrt(var + EPS)
    bias = beta - mean * scale
    return scale, bias


def _pick_rows(m, target):
    """Largest multiple of 8 that divides m and is <= target (else m)."""
    for cand in range(min(m, target) // 8 * 8, 7, -8):
        if m % cand == 0:
            return cand
    return m


def _row_spec(tr, c):
    return pl.BlockSpec((tr, c), lambda i: (i, 0))


def _full_spec(shape):
    return pl.BlockSpec(shape, lambda i: tuple(0 for _ in shape))


def _stat_spec(c):
    return pl.BlockSpec((None, 2, c), lambda i: (i, 0, 0))


# ----------------------------------------------------------------------------
# Forward pass
# ----------------------------------------------------------------------------
def bottleneck_forward_nhwc(x_nhwc, params, stride=1, row_tile=512):
    """ResNeXt Bottleneck forward.  NHWC in / NHWC out (TPU-native layout)."""
    if stride != 1:
        # TODO(synk): stride>1 grouped-conv / strided-shortcut path not implemented.
        raise NotImplementedError("only the stride=1 path is implemented")
    (w1, g1, b1, wd, g2, b2, w3, g3, b3, ws, gs, bs) = params
    n, h, w, cin = x_nhwc.shape
    cmid = w1.shape[1]
    cout = w3.shape[1]
    ctot = cmid + cout
    hw = h * w
    m = n * hw
    assert hw % 8 == 0, "H*W must be a multiple of 8 (sublane tiling)"

    x2d = x_nhwc.reshape(m, cin).astype(jnp.float32)

    # bf16 weights for the MXU (accumulation stays f32).
    wf = jnp.concatenate([w1, ws], axis=1).astype(jnp.bfloat16)         # (Cin, Cmid+Cout)
    wt = wd.reshape(9 * cmid, cmid).astype(jnp.bfloat16)                # taps stacked along K
    w3b = w3.astype(jnp.bfloat16)

    tm = _pick_rows(m, row_tile)
    nt = m // tm
    count = jnp.float32(m)
    parallel = pltpu.CompilerParams(dimension_semantics=("parallel",))

    # ---- stage 1: z = x @ [w1 || ws]   (+ partial stats for BN1 / shortcut BN) ----
    y1p, scp, st1 = pl.pallas_call(
        functools.partial(_stage1_kernel, cmid=cmid),
        out_shape=(jax.ShapeDtypeStruct((m, cmid), jnp.float32),
                   jax.ShapeDtypeStruct((m, cout), jnp.float32),
                   jax.ShapeDtypeStruct((nt, 2, ctot), jnp.float32)),
        grid_spec=pltpu.PrefetchScalarGridSpec(
            num_scalar_prefetch=0, grid=(nt,),
            in_specs=[_row_spec(tm, cin), _full_spec((cin, ctot))],
            out_specs=(_row_spec(tm, cmid), _row_spec(tm, cout), _stat_spec(ctot))),
        compiler_params=parallel,
    )(x2d, wf)

    st1 = st1.sum(axis=0)                                               # (2, Cmid+Cout)
    s1, o1 = _bn_fold(st1[:, :cmid], count, g1, b1)
    ss, os_ = _bn_fold(st1[:, cmid:], count, gs, bs)

    # ---- stage 2: BN1+ReLU, grouped 3x3 conv as one stacked-tap matmul (per image) ----
    # TODO(synk): for very large H*W, further tile stage 2 over row strips with 1-row halos.
    y2p, st2 = pl.pallas_call(
        _make_stage2_kernel(h, w),
        out_shape=(jax.ShapeDtypeStruct((m, cmid), jnp.float32),
                   jax.ShapeDtypeStruct((n, 2, cmid), jnp.float32)),
        grid_spec=pltpu.PrefetchScalarGridSpec(
            num_scalar_prefetch=0, grid=(n,),
            in_specs=[pl.BlockSpec((hw, cmid), lambda i: (i, 0)),
                      _full_spec((1, cmid)), _full_spec((1, cmid)),
                      _full_spec((9 * cmid, cmid))],
            out_specs=(pl.BlockSpec((hw, cmid), lambda i: (i, 0)),
                       _stat_spec(cmid))),
        compiler_params=parallel,
    )(y1p, s1, o1, wt)

    st2 = st2.sum(axis=0)
    s2, o2 = _bn_fold(st2, count, g2, b2)

    # ---- stage 3: BN2+ReLU, conv1x1 (mid -> out) ----
    y3p, st3 = pl.pallas_call(
        _stage3_kernel,
        out_shape=(jax.ShapeDtypeStruct((m, cout), jnp.float32),
                   jax.ShapeDtypeStruct((nt, 2, cout), jnp.float32)),
        grid_spec=pltpu.PrefetchScalarGridSpec(
            num_scalar_prefetch=0, grid=(nt,),
            in_specs=[_row_spec(tm, cmid),
                      _full_spec((1, cmid)), _full_spec((1, cmid)),
                      _full_spec((cmid, cout))],
            out_specs=(_row_spec(tm, cout), _stat_spec(cout))),
        compiler_params=parallel,
    )(y2p, s2, o2, w3b)

    st3 = st3.sum(axis=0)
    s3, o3 = _bn_fold(st3, count, g3, b3)

    # ---- stage 4: BN3 + shortcut BN + residual add + ReLU ----
    out2d = pl.pallas_call(
        _stage4_kernel,
        out_shape=jax.ShapeDtypeStruct((m, cout), jnp.float32),
        grid_spec=pltpu.PrefetchScalarGridSpec(
            num_scalar_prefetch=0, grid=(nt,),
            in_specs=[_row_spec(tm, cout), _row_spec(tm, cout),
                      _full_spec((1, cout)), _full_spec((1, cout)),
                      _full_spec((1, cout)), _full_spec((1, cout))],
            out_specs=_row_spec(tm, cout)),
        compiler_params=parallel,
    )(y3p, scp, s3, o3, ss, os_)

    return out2d.reshape(n, h, w, cout)


def bottleneck_forward(x_nchw, params, stride=1, row_tile=512):
    """NCHW adapter matching the PyTorch module's layout (adds two transposes;
    prefer bottleneck_forward_nhwc and keep activations channels-last)."""
    x = jnp.transpose(x_nchw, (0, 2, 3, 1))
    y = bottleneck_forward_nhwc(x, params, stride=stride, row_tile=row_tile)
    return jnp.transpose(y, (0, 3, 1, 2))


# ----------------------------------------------------------------------------
# Parameters + pure-JAX reference
# ----------------------------------------------------------------------------
def init_params(key, in_channel, out_channel):
    """Deterministic synthetic parameters matching the module's shapes."""
    mid = out_channel // 2
    G = CARDINALITY
    cpg = mid // G  # channels per group
    ks = jax.random.split(key, 8)

    w1 = jax.random.normal(ks[0], (in_channel, mid), jnp.float32) * 0.05
    # grouped 3x3 weight, per group (kh, kw, cin_g, cout_g)
    wg = jax.random.normal(ks[1], (G, 3, 3, cpg, cpg), jnp.float32) * 0.05
    # equivalent block-diagonal dense weight (3, 3, Cmid_in, Cmid_out)
    wd = jnp.zeros((3, 3, mid, mid), jnp.float32)
    for g in range(G):
        wd = wd.at[:, :, g * cpg:(g + 1) * cpg, g * cpg:(g + 1) * cpg].set(wg[g])
    w3 = jax.random.normal(ks[2], (mid, out_channel), jnp.float32) * 0.05
    ws = jax.random.normal(ks[3], (in_channel, out_channel), jnp.float32) * 0.05

    def bn_par(k, c):
        kg, kb = jax.random.split(k)
        gamma = 1.0 + 0.1 * jax.random.normal(kg, (1, c), jnp.float32)
        beta = 0.1 * jax.random.normal(kb, (1, c), jnp.float32)
        return gamma, beta

    g1, b1 = bn_par(ks[4], mid)
    g2, b2 = bn_par(ks[5], mid)
    g3, b3 = bn_par(ks[6], out_channel)
    gs, bs = bn_par(ks[7], out_channel)
    return (w1, g1, b1, wd, g2, b2, w3, g3, b3, ws, gs, bs)


def _reference_nhwc(x, params):
    """Pure-JAX f32 reference (training-mode BatchNorm; grouped conv via the
    equivalent block-diagonal dense 3x3 weight)."""
    (w1, g1, b1, wd, g2, b2, w3, g3, b3, ws, gs, bs) = params

    def bn(y, gamma, beta):
        mean = jnp.mean(y, axis=(0, 1, 2), keepdims=True)
        var = jnp.mean(jnp.square(y - mean), axis=(0, 1, 2), keepdims=True)
        return ((y - mean) * jax.lax.rsqrt(var + EPS) * gamma.reshape(1, 1, 1, -1)
                + beta.reshape(1, 1, 1, -1))

    y = jax.nn.relu(bn(jnp.einsum("nhwc,cd->nhwd", x, w1), g1, b1))
    y = jax.lax.conv_general_dilated(
        y, wd, window_strides=(1, 1), padding="SAME",
        dimension_numbers=("NHWC", "HWIO", "NHWC"))
    y = jax.nn.relu(bn(y, g2, b2))
    y = bn(jnp.einsum("nhwc,cd->nhwd", y, w3), g3, b3)
    s = bn(jnp.einsum("nhwc,cd->nhwd", x, ws), gs, bs)
    return jax.nn.relu(y + s)


if __name__ == "__main__":
    key = jax.random.PRNGKey(0)
    kx, kp = jax.random.split(key)

    # Cmid = Cout//2 must be divisible by cardinality=32 -> smallest sensible sizes.
    N, H, W, Cin = 2, 8, 8, 64
    Cout = 128  # in_channel != out_channel -> projection-shortcut path (as in the module)
    # TODO(synk): identity-shortcut variant (in_channel == out_channel) not exercised here.

    x = jax.random.normal(kx, (N, H, W, Cin), jnp.float32)   # channels-last (TPU-native)
    params = init_params(kp, Cin, Cout)

    # row_tile=32 -> 4 row tiles per 1x1-conv stage, exercising the tiled stats reduction.
    y = bottleneck_forward_nhwc(x, params, stride=1, row_tile=32)
    jax.block_until_ready(y)
    assert y.shape == (N, H, W, Cout) and y.dtype == jnp.float32

    ref = _reference_nhwc(x, params)
    np.testing.assert_allclose(np.asarray(y), np.asarray(ref), rtol=0.1, atol=0.1)
    print("KERNEL_OK")
</pallas_src>

<mosaic_0001>
module attributes {stable_mosaic.version = 11 : i64} {
  func.func @_stage1_kernel(%arg0: i32, %arg1: memref<32x64xf32, #tpu.memory_space<vmem>>, %arg2: memref<64x192xbf16, #tpu.memory_space<vmem>>, %arg3: memref<32x64xf32, #tpu.memory_space<vmem>>, %arg4: memref<32x128xf32, #tpu.memory_space<vmem>>, %arg5: memref<1x2x192xf32, #tpu.memory_space<vmem>>) attributes {dimension_semantics = [#tpu.dimension_semantics<parallel>], iteration_bounds = array<i64: 4>, scalar_prefetch = 0 : i64, scratch_operands = 0 : i64, tpu.core_type = #tpu.core_type<tc>, window_params = [{transform_indices = @transform_0, window_bounds = array<i64: 32, 64>}, {pipeline_mode = #tpu.pipeline_mode<synchronous>, transform_indices = @transform_1, window_bounds = array<i64: 64, 192>}, {transform_indices = @transform_2, window_bounds = array<i64: 32, 64>}, {transform_indices = @transform_3, window_bounds = array<i64: 32, 128>}, {transform_indices = @transform_4, window_bounds = array<i64: 1, 2, 192>}]} {
    %c0 = arith.constant 0 : index
    %c0_0 = arith.constant 0 : index
    %0 = vector.load %arg1[%c0, %c0_0] : memref<32x64xf32, #tpu.memory_space<vmem>>, vector<32x64xf32>
    %1 = arith.truncf %0 : vector<32x64xf32> to vector<32x64xbf16>
    %c0_1 = arith.constant 0 : index
    %c0_2 = arith.constant 0 : index
    %2 = vector.load %arg2[%c0_1, %c0_2] : memref<64x192xbf16, #tpu.memory_space<vmem>>, vector<64x192xbf16>
    %cst = arith.constant dense<0.000000e+00> : vector<32x192xf32>
    %3 = tpu.matmul %1, %2, %cst {dimension_numbers = #tpu.dot_dimension_numbers<[1], [0], [0], [1], [0, 0, 1, 1], [], []>} : vector<32x64xbf16>, vector<64x192xbf16>, vector<32x192xf32> -> vector<32x192xf32>
    %4 = vector.extract_strided_slice %3 {offsets = [0, 0], sizes = [32, 64], strides = [1, 1]} : vector<32x192xf32> to vector<32x64xf32>
    %c0_3 = arith.constant 0 : index
    %c0_4 = arith.constant 0 : index
    %5 = vector.load %arg3[%c0_3, %c0_4] : memref<32x64xf32, #tpu.memory_space<vmem>>, vector<32x64xf32>
    tpu.vector_store %arg3[%c0_3, %c0_4], %4 {strides = array<i32>} : memref<32x64xf32, #tpu.memory_space<vmem>>, vector<32x64xf32>,
    %6 = vector.extract_strided_slice %3 {offsets = [0, 64], sizes = [32, 128], strides = [1, 1]} : vector<32x192xf32> to vector<32x128xf32>
    %c0_5 = arith.constant 0 : index
    %c0_6 = arith.constant 0 : index
    %7 = vector.load %arg4[%c0_5, %c0_6] : memref<32x128xf32, #tpu.memory_space<vmem>>, vector<32x128xf32>
    tpu.vector_store %arg4[%c0_5, %c0_6], %6 {strides = array<i32>} : memref<32x128xf32, #tpu.memory_space<vmem>>, vector<32x128xf32>,
    %cst_7 = arith.constant dense<0.000000e+00> : vector<192xf32>
    %8 = vector.multi_reduction <add>, %3, %cst_7 [0] : vector<32x192xf32> to vector<192xf32>
    %9 = vector.shape_cast %8 : vector<192xf32> to vector<1x192xf32>
    %10 = arith.mulf %3, %3 : vector<32x192xf32>
    %cst_8 = arith.constant dense<0.000000e+00> : vector<192xf32>
    %11 = vector.multi_reduction <add>, %10, %cst_8 [0] : vector<32x192xf32> to vector<192xf32>
    %12 = vector.shape_cast %11 : vector<192xf32> to vector<1x192xf32>
    %13 = tpu.concatenate %9, %12 in 0 : vector<1x192xf32>, vector<1x192xf32> -> vector<2x192xf32>
    %c0_9 = arith.constant 0 : index
    %c0_10 = arith.constant 0 : index
    %c0_11 = arith.constant 0 : index
    %14 = vector.load %arg5[%c0_9, %c0_10, %c0_11] : memref<1x2x192xf32, #tpu.memory_space<vmem>>, vector<1x2x192xf32>
    %15 = vector.shape_cast %14 : vector<1x2x192xf32> to vector<2x192xf32>
    %16 = vector.shape_cast %13 : vector<2x192xf32> to vector<1x2x192xf32>
    tpu.vector_store %arg5[%c0_9, %c0_10, %c0_11], %16 {strides = array<i32>} : memref<1x2x192xf32, #tpu.memory_space<vmem>>, vector<1x2x192xf32>,
    return
  }
  func.func @transform_0(%arg0: i32) -> (i32, i32) {
    %c0_i32 = arith.constant 0 : i32
    %c0_i32_0 = arith.constant 0 : i32
    return %arg0, %c0_i32 : i32, i32
  }
  func.func @transform_1(%arg0: i32) -> (i32, i32) {
    %c0_i32 = arith.constant 0 : i32
    %c0_i32_0 = arith.constant 0 : i32
    %c0_i32_1 = arith.constant 0 : i32
    return %c0_i32, %c0_i32_0 : i32, i32
  }
  func.func @transform_2(%arg0: i32) -> (i32, i32) {
    %c0_i32 = arith.constant 0 : i32
    %c0_i32_0 = arith.constant 0 : i32
    return %arg0, %c0_i32 : i32, i32
  }
  func.func @transform_3(%arg0: i32) -> (i32, i32) {
    %c0_i32 = arith.constant 0 : i32
    %c0_i32_0 = arith.constant 0 : i32
    return %arg0, %c0_i32 : i32, i32
  }
  func.func @transform_4(%arg0: i32) -> (i32, i32, i32) {
    %c0_i32 = arith.constant 0 : i32
    %c0_i32_0 = arith.constant 0 : i32
    %c0_i32_1 = arith.constant 0 : i32
    return %arg0, %c0_i32, %c0_i32_0 : i32, i32, i32
  }
}

</mosaic_0001>

<bundles_post_ra>
// kernel: tpu_custom_call.1
= control target key start
LH: loop header
LB: loop body
LE: loop exit
PB: predicated region body
PF: predicated region fallthrough
CT: control target
= control target key end

     0   :  { %10 = vsyncpa [#allocation3], 0  ;;  %s1028_s0 = inlined_call_operand.vmem [shape: f32[128,64], index: 0, kind: input, shape index: {}]   ;;  %s1029_s1 = inlined_call_operand.vmem [shape: bf16[64,192], index: 1, kind: input, shape index: {}]   ;;  %s1030_s2 = inlined_call_operand.vmem [shape: f32[128,64], index: 2, kind: output, shape index: {0}]   ;;  %s1031_s3 = inlined_call_operand.hbm [shape: f32[128,128], index: 3, kind: output, shape index: {1}]   ;;  %s1032_s4 = inlined_call_operand.hbm [shape: f32[4,2,192], index: 4, kind: output, shape index: {2}]  }
   0x1   :  { %12 = vsyncpa [#allocation3 + $0x1], 0 }
   0x2   :  { %13 = vsyncpa [#allocation5], 0 }
   0x3   :  { %15 = vsyncpa [#allocation5 + $0x1], 0  ;;  %s836_s15 = smov 0   ;;  %s838_s16 = smov 0  }
   0x4   :  { %s840_s17 = smov 0   ;;  %s842_s18 = smov 0  }
   0x5 LB: > { %s857_s19 = sadd.s32 4294967295, %s802_s18   ;;  %s609_s20 = sadd.s32 4294967294, %s802_s18   ;;  %s802_s18 = sphi %s842_s18, %s1038_s18   ;;  %s798_s17 = sphi %s840_s17, %s1037_s17   ;;  %s794_s16 = sphi %s838_s16, %s1036_s16   ;;  %s790_s15 = sphi %s836_s15, %s1035_s15  }
   0x6   : > { %s861_s21 = sadd.s32 1, %s802_s18   ;;  %s101_s22 = sadd.s32 1, %s798_s17 }
   0x7   : > { %s98_s23 = ssub.s32 %s802_s18, %s861_s21  ;;  %p111_p0 = scmp.ne.s32.totalorder %s798_s17, %s794_s16 }
   0x8   : > { %p99_p1 = scmp.eq.s32.totalorder %s98_s23, 0  ;;  %p112_p2 = scmp.eq.s32.totalorder %s857_s19, 3 }
   0x9   : > { %p117_p3 = scmp.ne.s32.totalorder %s794_s16, %s790_s15  ;;  %p118_p4 = scmp.eq.s32.totalorder %s609_s20, 3 }
   0xa   : > { %s872_s24 = scalar_select %p99_p1, %s798_s17, %s101_s22  }
   0xb   : > { %p874_p5 = por %p112_p2, %p111_p0  ;;  %p878_p6 = por %p118_p4, %p117_p3 }
   0xc   : > { %p612_p7 = scmp.ge.s32.totalorder %s802_s18, 1  ;;  %p174_p8 = scmp.lt.s32.totalorder %s802_s18, 5 }
   0xe   : > { %p175_p9 = pnand %p612_p7, %p174_p8 }
   0xf   : > { %v696_v0 = vld [vmem:[%s1029_s1 + $0x4] ss:$8 sps:$4 sm:$0xff] (!%p175_p9)   ;;  %s615_s29 = sshll.u32 (!%p175_p9), %s857_s19, 2  ;;  %v698_v1 = vld [vmem:[%s1029_s1] ss:$8 sps:$4 sm:$0xff] (!%p175_p9)   ;;  %v804_v2 = vmov (!%p175_p9), 0  }
  0x10   : > { %178 = sbr.rel (%p175_p9) target bundleno = 389 (0x185), region = 28  ;;  %317 = vmatprep.mubr.bf16.mxu0 (!%p175_p9), %v804_v2  ;;  %327 = vmatprep.mubr.bf16.mxu1 (!%p175_p9), %v804_v2  ;;  %p211_p10 = scmp.lt.s32.totalorder (!%p175_p9), %s615_s29, 15  ;;  %v699_v3 = vld [vmem:[%s1029_s1 + $0x14] ss:$8 sps:$4 sm:$0xff] (!%p175_p9)   ;;  %v701_v4 = vld [vmem:[%s1029_s1 + $0x10] ss:$8 sps:$4 sm:$0xff] (!%p175_p9)  }
  0x11   : > { %285 = vmatprep.subr.bf16.mxu0 (!%p175_p9), %v696_v0  ;;  %639 = vmatprep.subr.bf16.mxu1 (!%p175_p9), %v696_v0  ;;  %v702_v5 = vld [vmem:[%s1029_s1 + $0x24] ss:$8 sps:$4 sm:$0xff] (!%p175_p9)   ;;  %v704_v6 = vld [vmem:[%s1029_s1 + $0x20] ss:$8 sps:$4 sm:$0xff] (!%p175_p9)   ;;  %v705_v7 = vld [vmem:[%s1029_s1 + $0x34] ss:$8 sps:$4 sm:$0xff] (!%p175_p9)  }
  0x12   : > { %286 = vmatpush1.bf16.msra.mxu0 (!%p175_p9), %v698_v1  ;;  %643 = vmatpush1.bf16.msra.mxu1 (!%p175_p9), %v698_v1  ;;  %v707_v8 = vld [vmem:[%s1029_s1 + $0x30] ss:$8 sps:$4 sm:$0xff] (!%p175_p9)   ;;  %vm278_vm0 = vcmask (!%p175_p9), 523264   ;;  %s805_s8 = smov (!%p175_p9), 64   ;;  %v806_v63 = vmov (!%p175_p9), 1983009808   ;;  %v439_v1 = vlaneseq (!%p175_p9) }
  0x13   : > { %287 = vmatprep.subr.bf16.mxu0 (!%p175_p9), %v699_v3  ;;  %640 = vmatprep.subr.bf16.mxu1 (!%p175_p9), %v699_v3  ;;  %v437_v0 = vunpack.c.l.s4 (!%p175_p9), %v806_v63  ;;  %s941_s9 = sand.u32 (!%p175_p9), 1, %s794_s16   ;;  %vm430_vm1 = vcmask (!%p175_p9), 1040384   ;;  %vm444_vm2 = vcmask (!%p175_p9), 1041408   ;;  %vm445_vm3 = vcmask (!%p175_p9), 519170   ;;  %s638_s11 = sshll.u32 (!%p175_p9), %s857_s19, 6 }
  0x14   : > { %s614_s10 = sshll.u32 (!%p175_p9), %s941_s9, 2  ;;  %vm446_vm4 = vmor (!%p175_p9), %vm445_vm3, %vm444_vm2  ;;  %s948_s22 = scalar_lea.hbm (!%p175_p9), %s1032_s4, %s638_s11 }
  0x15   : > { %s807_s28 = smov (!%p175_p9), [#allocation4]  }
  0x16   : > { %288 = vmatpush1.bf16.msra.mxu0 (!%p175_p9), %v701_v4  ;;  %644 = vmatpush1.bf16.msra.mxu1 (!%p175_p9), %v701_v4  ;;  %s712_s30 = sshll.u32 (!%p175_p9), %s807_s28, 4  ;;  %s713_s30 = int_to_ptr.vmem [resolvable:$false] %s712_s30 }
  0x17   : > { %s1040_s29 = smov (!%p211_p10, %s615_s29), 15  ;;  %289 = vmatprep.subr.bf16.mxu0 %v702_v5  ;;  %641 = vmatprep.subr.bf16.mxu1 %v702_v5  ;;  %s714_s5 = scalar_lea.vmem %s713_s30, 128 }
  0x18   : > { %s616_s12 = sshll.u32 %s1040_s29, 3 }
  0x19   : > { %s214_s23 = scalar_lea.vmem %s1028_s0, %s616_s12  ;;  %s220_s7 = scalar_lea.vmem %s1030_s2, %s616_s12 }
  0x1a   : > { %v224_v9 = vld [vmem:[%s214_s23] sm:$0xff]  ;;  %290 = vmatpush1.bf16.msra.mxu0 %v704_v6  ;;  %645 = vmatpush1.bf16.msra.mxu1 %v704_v6  ;;  %v225_v10 = vld [vmem:[%s214_s23 + $0x8] sm:$0xff]  ;;  %v226_v11 = vld [vmem:[%s214_s23 + $0x10] sm:$0xff]  ;;  %s209_s12 = scalar_lea.vmem [#allocation4], %s614_s10 }
  0x1b   : > { %v227_v12 = vld [vmem:[%s214_s23 + $0x18] sm:$0xff]  ;;  %291 = vmatprep.subr.bf16.mxu0 %v705_v7  ;;  %642 = vmatprep.subr.bf16.mxu1 %v705_v7  ;;  %v228_v13 = vpack.c.bf16 %v225_v10, %v224_v9  ;;  %v438_v9 = vunpack.c.0.s8 %v437_v0  ;;  %v440_v10 = vshrl.u32 %v439_v1, 7  ;;  %s493_s13 = sshll.u32 %s209_s12, 4  ;;  %s459_s23 = scalar_lea.sflag [#allocation5], %s941_s9  ;;  %s950_s13 = int_to_ptr.vmem [resolvable:$true] %s493_s13 }
  0x1c   : > { %v229_v14 = vpack.c.bf16 %v227_v12, %v226_v11  ;;  %s708_s27 = scalar_lea.vmem %s950_s13, 64  ;;  %p715_p0 = scmp.lt.s32.totalorder %s950_s13, %s713_s30 }
  0x1d   : > { %p709_p11 = scmp.ne.s32.totalorder %s950_s13, %s708_s27  ;;  %p716_p1 = scmp.lt.s32.totalorder %s714_s5, %s708_s27 }
  0x1e   : > { %292 = vmatpush1.bf16.msra.mxu0 %v707_v8  ;;  %646 = vmatpush1.bf16.msra.mxu1 %v707_v8 }
  0x1f   : > { %p710_p12 = pnand %p709_p11, %p874_p5  ;;  %p717_p2 = por %p716_p1, %p715_p0 }
  0x21   : > { %627 = vmatmul.mubr.msk.bf16.vlgmr.msra.gmra.mrb[0].mxu0 %vm278_vm0, %v228_v13  ;;  %628 = vmatmul.mubr.msk.bf16.vlgmr.msra.gmra.mrb[0].mxu1 %vm278_vm0, %v229_v14  ;;  %p711_p13 = pneg %p710_p12 }
  0x23   : > { %p718_p3 = pnand %p717_p2, %p711_p13 }
  0xf4   : > { %v319_v15 = vpop.f32.mrb[0].mxu0  ;;  %v329_v16 = vpop.f32.mrb[0].mxu1 }
  0xf5   : > { %338 = vst.msk [vmem:[%s220_s7] sm:$0xff] %vm278_vm0, %v319_v15  ;;  %v400_v17 = vmul.f32 %v319_v15, %v319_v15  ;;  %340 = vst.msk [vmem:[%s220_s7 + $0x10] sm:$0xff] %vm278_vm0, %v329_v16  ;;  %v331_v18 = vpop.f32.mrb[1].mxu1  ;;  %350 = vrot.lane.b32.xlu0 %v319_v15, %s805_s8  ;;  %v321_v19 = vpop.f32.mrb[1].mxu0  ;;  %v404_v23 = vmul.f32 %v329_v16, %v329_v16 }
  0xf6   : > { %v401_v20 = vmul.f32 %v321_v19, %v321_v19  ;;  %360 = vrot.lane.b32.xlu1 %v331_v18, %s805_s8  ;;  %v323_v21 = vpop.f32.mrb[2].mxu0  ;;  %v333_v22 = vpop.f32.mrb[2].mxu1  ;;  %v405_v28 = vmul.f32 %v331_v18, %v331_v18  ;;  %v387_v29 = vsel %vm278_vm0, %v321_v19, 0.0  ;;  %v390_v32 = vsel %vm278_vm0, %v331_v18, 0.0 }
  0xf7   : > { %339 = vst.msk [vmem:[%s220_s7 + $0x8] sm:$0xff] %vm278_vm0, %v323_v21  ;;  %v378_v24 = vadd.f32 %v323_v21, %v319_v15  ;;  %v402_v25 = vmul.f32 %v323_v21, %v323_v21  ;;  %341 = vst.msk [vmem:[%s220_s7 + $0x18] sm:$0xff] %vm278_vm0, %v333_v22  ;;  %v325_v26 = vpop.f32.mrb[3].mxu0  ;;  %v335_v27 = vpop.f32.mrb[3].mxu1  ;;  %v406_v37 = vmul.f32 %v333_v22, %v333_v22 }
  0xf8   : > { %v388_v30 = vsel %vm278_vm0, %v325_v26, 0.0  ;;  %v403_v31 = vmul.f32 %v325_v26, %v325_v26  ;;  %v417_v36 = vsel %vm278_vm0, %v401_v20, 0.0  ;;  %v407_v39 = vmul.f32 %v335_v27, %v335_v27 }
  0xf9   : > { %v408_v33 = vadd.f32 %v402_v25, %v400_v17  ;;  %v379_v34 = vadd.f32 %v378_v24, %v329_v16  ;;  %v389_v35 = vadd.f32 %v388_v30, %v387_v29  ;;  %358 = vrot.lane.b32.xlu0 %v329_v16, %s805_s8  ;;  %v420_v44 = vsel %vm278_vm0, %v405_v28, 0.0 }
  0xfa   : > { %v418_v38 = vsel %vm278_vm0, %v403_v31, 0.0  ;;  %354 = vrot.lane.b32.xlu1 %v323_v21, %s805_s8  ;;  %v392_v45 = vsel %vm278_vm0, %v335_v27, 0.0  ;;  %v422_v50 = vsel %vm278_vm0, %v407_v39, 0.0  ;;  %v441_v17 = vsub.s32 %v438_v9, %v440_v10 }
  0xfb   : > { %v380_v40 = vadd.f32 %v379_v34, %v333_v22  ;;  %v409_v41 = vadd.f32 %v408_v33, %v404_v23  ;;  %v419_v42 = vadd.f32 %v418_v38, %v417_v36  ;;  %v391_v43 = vadd.f32 %v390_v32, %v389_v35 }
  0xfd   : > { %v381_v46 = vrot.slane %v380_v40, 4  ;;  %v410_v47 = vadd.f32 %v409_v41, %v406_v37  ;;  %v393_v48 = vadd.f32 %v392_v45, %v391_v43  ;;  %v421_v49 = vadd.f32 %v420_v44, %v419_v42  ;;  %352 = vrot.lane.b32.xlu0 %v321_v19, %s805_s8 }
  0xfe   : > { %356 = vrot.lane.b32.xlu1 %v325_v26, %s805_s8 }
  0xff   : > { %v382_v51 = vadd.f32 %v381_v46, %v380_v40  ;;  %v411_v52 = vrot.slane %v410_v47, 4  ;;  %v394_v53 = vrot.slane %v393_v48, 4  ;;  %v423_v54 = vadd.f32 %v422_v50, %v421_v49 }
 0x101   : > { %v383_v55 = vrot.slane %v382_v51, 2  ;;  %v412_v56 = vadd.f32 %v411_v52, %v410_v47  ;;  %v395_v57 = vadd.f32 %v394_v53, %v393_v48  ;;  %v424_v58 = vrot.slane %v423_v54, 4  ;;  %362 = vrot.lane.b32.xlu0 %v333_v22, %s805_s8 }
 0x102   : > { %364 = vrot.lane.b32.xlu1 %v335_v27, %s805_s8 }
 0x103   : > { %v384_v59 = vadd.f32 %v383_v55, %v382_v51  ;;  %v413_v60 = vrot.slane %v412_v56, 2  ;;  %v396_v61 = vrot.slane %v395_v57, 2  ;;  %v425_v62 = vadd.f32 %v424_v58, %v423_v54 }
 0x105   : > { %v385_v2 = vrot.slane %v384_v59, 1  ;;  %v414_v3 = vadd.f32 %v413_v60, %v412_v56  ;;  %v397_v4 = vadd.f32 %v396_v61, %v395_v57  ;;  %v426_v5 = vrot.slane %v425_v62, 2 }
 0x107   : > { %v415_v6 = vrot.slane %v414_v3, 1  ;;  %v398_v7 = vrot.slane %v397_v4, 1  ;;  %v427_v8 = vadd.f32 %v426_v5, %v425_v62  ;;  %v386_v11 = vadd.f32 %v385_v2, %v384_v59 }
 0x109   : > { %v416_v12 = vadd.f32 %v415_v6, %v414_v3  ;;  %v428_v13 = vrot.slane %v427_v8, 1  ;;  %v399_v14 = vadd.f32 %v398_v7, %v397_v4 }
 0x10b   : > { %v429_v15 = vadd.f32 %v428_v13, %v427_v8  ;;  %v431_v16 = vsel %vm430_vm1, %v386_v11, %v416_v12 }
 0x10d   : > { %v432_v18 = vsel %vm430_vm1, %v399_v14, %v429_v15 }
 0x10e   : > { %v435_v19 = vcombine.low %v431_v16, %v432_v18 }
 0x110   : > { %v442_v20 = vrot.slane %v435_v19, %v441_v17 }
 0x112   : > { %447 = vst.msk [vmem:[%s209_s12] sm:$0xf] %vm446_vm4, %v442_v20 }
 0x113   : > { %721 = shalt.err (!%p718_p3)
}
 0x114   : > { %s722_s29 = scalar_lea.hbm %s948_s22, 64  ;;  %s726_s8 = scalar_lea.hbm %s1032_s4, 256 }
 0x115   : > { %p723_p4 = scmp.ne.s32.totalorder %s948_s22, %s722_s29  ;;  %p727_p9 = scmp.lt.u32.totalorder %s948_s22, %s1032_s4 }
 0x116   : > { %p728_p10 = scmp.lt.u32.totalorder %s726_s8, %s722_s29  ;;  %p730_p12 = scmp.lt.u32.totalorder %s722_s29, %s948_s22 }
 0x117   : > { %p724_p7 = pnand %p723_p4, %p874_p5 }
 0x118   : > { %p729_p11 = por %p728_p10, %p727_p9 }
 0x119   : > { %p725_p8 = pneg %p724_p7 }
 0x11a   : > { %p731_p13 = por %p730_p12, %p729_p11 }
 0x11c   : > { %p732_p0 = pnand %p731_p13, %p725_p8 }
 0x11e   : > { %735 = shalt.err (!%p732_p0)
}
 0x11f   : > { %648 = dma.vmem_to_hbm [thread:$0]  (%p874_p5), %s950_s13, 64, %s948_s22, %s459_s23  }
 0x120   : > { %s613_s12 = sshll.u32 %s941_s9, 5  ;;  %s637_s13 = sshll.u32 %s857_s19, 9 }
 0x121   : > { %s202_s14 = scalar_lea.vmem [#allocation2], %s613_s12  ;;  %s984_s27 = scalar_lea.hbm %s1031_s3, %s637_s13 }
 0x122   : > { %s476_s20 = sshll.u32 %s202_s14, 4  ;;  %s454_s28 = scalar_lea.sflag [#allocation3], %s941_s9  ;;  %s979_s20 = int_to_ptr.vmem [resolvable:$true] %s476_s20 }
 0x123   : > { %s736_s30 = scalar_lea.vmem %s979_s20, 512  ;;  %s808_s19 = smov [#allocation2]  }
 0x124   : > { %p737_p1 = scmp.ne.s32.totalorder %s979_s20, %s736_s30  ;;  %s740_s5 = sshll.u32 %s808_s19, 4  ;;  %s741_s5 = int_to_ptr.vmem [resolvable:$false] %s740_s5 }
 0x125   : > { %s742_s29 = scalar_lea.vmem %s741_s5, 1024  ;;  %p743_p4 = scmp.lt.s32.totalorder %s979_s20, %s741_s5 }
 0x126   : > { %p738_p2 = pnand %p737_p1, %p874_p5  ;;  %p744_p7 = scmp.lt.s32.totalorder %s742_s29, %s736_s30 }
 0x128   : > { %p739_p3 = pneg %p738_p2  ;;  %p745_p8 = por %p744_p7, %p743_p4 }
 0x12a   : > { %p746_p9 = pnand %p745_p8, %p739_p3 }
 0x167   : > { %v351_v21 = vpop.permute.xlu0 %350 }
 0x168   : > { %v361_v22 = vpop.permute.xlu1 %360 }
 0x16b   : > { %v359_v23 = vpop.permute.xlu0 %358 }
 0x16c   : > { %v368_v24 = vsel %vm278_vm0, %v359_v23, %v361_v22  ;;  %v355_v25 = vpop.permute.xlu1 %354 }
 0x16d   : > { %376 = vst [vmem:[%s202_s14 + $0x10] sm:$0xff] %v368_v24 }
 0x16f   : > { %v353_v26 = vpop.permute.xlu0 %352 }
 0x170   : > { %v366_v27 = vsel %vm278_vm0, %v351_v21, %v353_v26  ;;  %v357_v28 = vpop.permute.xlu1 %356 }
 0x171   : > { %374 = vst [vmem:[%s202_s14] sm:$0xff] %v366_v27  ;;  %v367_v29 = vsel %vm278_vm0, %v355_v25, %v357_v28 }
 0x172   : > { %375 = vst [vmem:[%s202_s14 + $0x8] sm:$0xff] %v367_v29 }
 0x173   : > { %v363_v30 = vpop.permute.xlu0 %362 }
 0x174   : > { %v365_v31 = vpop.permute.xlu1 %364 }
 0x175   : > { %v369_v32 = vsel %vm278_vm0, %v363_v30, %v365_v31 }
 0x176   : > { %377 = vst [vmem:[%s202_s14 + $0x18] sm:$0xff] %v369_v32 }
 0x177   : > { %749 = shalt.err (!%p746_p9)
}
 0x178   : > { %s750_s6 = scalar_lea.hbm %s984_s27, 512  ;;  %s754_s10 = scalar_lea.hbm %s1031_s3, 2048 }
 0x179   : > { %p751_p10 = scmp.ne.s32.totalorder %s984_s27, %s750_s6  ;;  %p755_p13 = scmp.lt.u32.totalorder %s984_s27, %s1031_s3 }
 0x17a   : > { %p756_p0 = scmp.lt.u32.totalorder %s754_s10, %s750_s6  ;;  %p758_p2 = scmp.lt.u32.totalorder %s750_s6, %s984_s27 }
 0x17b   : > { %p752_p11 = pnand %p751_p10, %p874_p5 }
 0x17c   : > { %p757_p1 = por %p756_p0, %p755_p13 }
 0x17d   : > { %p753_p12 = pneg %p752_p11 }
 0x17e   : > { %p759_p3 = por %p758_p2, %p757_p1 }
 0x180   : > { %p760_p4 = pnand %p759_p3, %p753_p12 }
 0x182   : > { %763 = shalt.err (!%p760_p4)
}
 0x183   : > { %s809_s14 = smov 128   ;;  %s810_s13 = smov 8  }
 0x184   : > { %647 = dma.vmem_to_hbm [thread:$0]  (%p874_p5), %s979_s20, 512, %s984_s27, %s454_s28, %s809_s14, %s809_s14, %s810_s13  }
 0x185 PF: > { %p658_p7 = scmp.ge.s32.totalorder %s802_s18, 2  ;;  %s513_s22 = sand.u32 1, %s790_s15  }
 0x186   : > { %s514_s23 = scalar_lea.sflag [#allocation3], %s513_s22 }
 0x187   : > { %p652_p8 = pnand %p658_p7, %p878_p6 }
 0x189   : > { %781 = dma.done.wait (!%p652_p8), %s514_s23, 512  }
 0x18a   : > { %783 = vsyncadd (!%p652_p8), %s514_s23, 4294966784  ;;  %s523_s30 = scalar_lea.sflag [#allocation5], %s513_s22 }
 0x18b   : > { %785 = dma.done.wait (!%p652_p8), %s523_s30, 64  }
 0x18c   : > { %787 = vsyncadd (!%p652_p8), %s523_s30, 4294967232  ;;  %p18_p5 = scmp.ge.s32.totalorder %s861_s21, 6   ;;  %s1035_s15 = smov %s794_s16 }
 0x18d   : > { %s1036_s16 = smov %s798_s17  ;;  %s1037_s17 = smov %s872_s24 }
 0x18e   : > { %s1038_s18 = smov %s861_s21  ;;  %20 = sbr.rel (!%p18_p5) target bundleno = 5 (0x5), region = 92 }
 0x195   :  { %528 = vsyncpa [#allocation3], 1 }
 0x196   :  { %530 = vsyncpa [#allocation3 + $0x1], 1 }
 0x197   :  { %531 = vsyncpa [#allocation5], 1 }
 0x198   :  { %533 = vsyncpa [#allocation5 + $0x1], 1 }

</bundles_post_ra>
